<compile_context>
chip_gen: v7x
topology: tpu7x:2x2x1
jax: 0.10.0
libtpu: 0.0.40
codegen_flags: <defaults>
</compile_context>

<pallas_src>
import math
import functools

import jax
import jax.numpy as jnp
from jax.experimental import pallas as pl
from jax.experimental.pallas import tpu as pltpu


def _sinusoidal_kernel(t_ref, tab_ref, o_ref, *, half_dim: int, aligned: bool):
    """One batch tile of sinusoidal position embeddings.

    t_ref:   [TB, 1]  timesteps (int or float, cast to f32 here)
    tab_ref: aligned -> [1, half_dim] freq table
             else    -> [2, dim]      row 0 = freq duplicated, row 1 = phase (0 / pi/2)
    o_ref:   [TB, dim] f32 output
    """
    t = t_ref[...].astype(jnp.float32)                     # [TB, 1]

    if aligned:
        # Both halves land at lane offsets that are multiples of 128 -> two unmasked,
        # lane-aligned slice stores; numerics identical to the reference.
        freq = tab_ref[...]                                # [1, half_dim]
        emb = t * freq                                     # [TB, half_dim]
        o_ref[:, :half_dim] = jnp.sin(emb)
        o_ref[:, half_dim:] = jnp.cos(emb)
    else:
        # Full-width argument + single sin + single full-width store (no lane shift,
        # no masked partial store at a non-zero lane offset).  cos(x) = sin(x + pi/2).
        freq = tab_ref[0:1, :]                             # [1, dim] (duplicated freq)
        phase = tab_ref[1:2, :]                            # [1, dim] (0 | pi/2)
        o_ref[...] = jnp.sin(t * freq + phase)             # [TB, dim]


def _choose_tb(B: int, dim: int) -> int:
    """Batch tile size: VMEM-aware and >= 2 grid steps for larger B (v7x megacore)."""
    # Output double-buffer is the dominant VMEM consumer: 2 * tb * dim * 4 bytes.
    # Keep it under ~12 MiB so v5e's 16 MiB default scoped-VMEM limit has headroom.
    vmem_budget = 12 * 1024 * 1024
    max_tb = max(8, (vmem_budget // (2 * dim * 4)) // 8 * 8)
    if B <= 16:
        return B                       # full-array block (always a legal block shape)
    tb = ((B + 1) // 2 + 7) // 8 * 8   # ~half the batch, rounded up to sublane multiple
    return max(8, min(tb, max_tb))


def sinusoidal_position_embeddings(time: jax.Array, dim: int) -> jax.Array:
    """JAX wrapper: time [B] (or [B, 1]) -> embeddings [B, dim] f32."""
    assert dim % 2 == 0 and dim >= 4, "dim must be even and >= 4"
    if time.ndim == 2:
        assert time.shape[1] == 1
        time = time[:, 0]
    B = time.shape[0]
    half_dim = dim // 2
    aligned = (half_dim % 128 == 0)

    # Keep the original dtype (int diffusion steps stay int); cast in-kernel.
    t2d = time.reshape(B, 1)

    # Hoisted frequency (and phase) table: computed once, resident across grid steps.
    scale = math.log(10000.0) / (half_dim - 1)
    freq = jnp.exp(jnp.arange(half_dim, dtype=jnp.float32) * (-scale))   # [half_dim]
    if aligned:
        tab = freq.reshape(1, half_dim)                                  # [1, half_dim]
    else:
        freq_dup = jnp.concatenate([freq, freq]).reshape(1, dim)
        phase = jnp.concatenate(
            [jnp.zeros((half_dim,), jnp.float32),
             jnp.full((half_dim,), 0.5 * math.pi, jnp.float32)]
        ).reshape(1, dim)
        tab = jnp.concatenate([freq_dup, phase], axis=0)                 # [2, dim]

    tb = _choose_tb(B, dim)
    grid = (pl.cdiv(B, tb),)

    kernel = functools.partial(_sinusoidal_kernel, half_dim=half_dim, aligned=aligned)
    return pl.pallas_call(
        kernel,
        out_shape=jax.ShapeDtypeStruct((B, dim), jnp.float32),
        grid=grid,
        in_specs=[
            pl.BlockSpec((tb, 1), lambda i: (i, 0)),
            pl.BlockSpec(tab.shape, lambda i: (0, 0)),   # constant: table stays resident
        ],
        out_specs=pl.BlockSpec((tb, dim), lambda i: (i, 0)),
        compiler_params=pltpu.CompilerParams(
            dimension_semantics=("parallel",),
        ),
    )(t2d, tab)


def _reference(time: jax.Array, dim: int) -> jax.Array:
    """Pure-JAX reference mirroring the PyTorch forward."""
    half_dim = dim // 2
    emb = math.log(10000.0) / (half_dim - 1)
    emb = jnp.exp(jnp.arange(half_dim, dtype=jnp.float32) * -emb)
    emb = time.astype(jnp.float32)[:, None] * emb[None, :]
    return jnp.concatenate([jnp.sin(emb), jnp.cos(emb)], axis=-1)


def _check(time: jax.Array, dim: int) -> None:
    out = jax.block_until_ready(sinusoidal_position_embeddings(time, dim))
    ref = _reference(time, dim)
    assert out.shape == (time.shape[0], dim), out.shape
    assert out.dtype == jnp.float32, out.dtype
    # Tolerance sized for f32 sin/cos of arguments up to ~1e3 (and the
    # cos(x)=sin(x+pi/2) rewrite on the un-aligned path).
    max_err = float(jnp.max(jnp.abs(out - ref)))
    assert jnp.allclose(out, ref, atol=5e-3, rtol=1e-4), (
        f"mismatch vs reference (dim={dim}, B={time.shape[0]}), max_err={max_err}")


if __name__ == "__main__":
    key = jax.random.PRNGKey(0)

    # Primary small config: B=8, dim=32 (un-aligned path, single grid step).
    time = jax.random.randint(key, (8,), 0, 1000, dtype=jnp.int32)
    _check(time, 32)

    # Multi-step grid + partial final block (un-aligned path): B=20, dim=32.
    time2 = jax.random.randint(jax.random.PRNGKey(1), (20,), 0, 1000, dtype=jnp.int32)
    _check(time2, 32)

    # Aligned path (half_dim % 128 == 0): B=8, dim=256 -> exact-reference split stores.
    _check(time, 256)

    print("KERNEL_OK")
</pallas_src>

<mosaic_0001>
module attributes {stable_mosaic.version = 11 : i64} {
  func.func @_sinusoidal_kernel(%arg0: i32, %arg1: memref<8x1xi32, #tpu.memory_space<vmem>>, %arg2: memref<2x32xf32, #tpu.memory_space<vmem>>, %arg3: memref<8x32xf32, #tpu.memory_space<vmem>>) attributes {dimension_semantics = [#tpu.dimension_semantics<parallel>], iteration_bounds = array<i64: 1>, scalar_prefetch = 0 : i64, scratch_operands = 0 : i64, tpu.core_type = #tpu.core_type<tc>, window_params = [{transform_indices = @transform_0, window_bounds = array<i64: 8, 1>}, {pipeline_mode = #tpu.pipeline_mode<synchronous>, transform_indices = @transform_1, window_bounds = array<i64: 2, 32>}, {transform_indices = @transform_2, window_bounds = array<i64: 8, 32>}]} {
    %c0 = arith.constant 0 : index
    %c0_0 = arith.constant 0 : index
    %0 = vector.load %arg1[%c0, %c0_0] : memref<8x1xi32, #tpu.memory_space<vmem>>, vector<8x1xi32>
    %1 = arith.sitofp %0 : vector<8x1xi32> to vector<8x1xf32>
    %c0_1 = arith.constant 0 : index
    %c0_2 = arith.constant 0 : index
    %2 = vector.load %arg2[%c0_1, %c0_2] : memref<2x32xf32, #tpu.memory_space<vmem>>, vector<1x32xf32>
    %c1 = arith.constant 1 : index
    %c0_3 = arith.constant 0 : index
    %3 = vector.load %arg2[%c1, %c0_3] : memref<2x32xf32, #tpu.memory_space<vmem>>, vector<1x32xf32>
    %4 = vector.broadcast %1 : vector<8x1xf32> to vector<8x32xf32>
    %5 = vector.broadcast %2 : vector<1x32xf32> to vector<8x32xf32>
    %6 = arith.mulf %4, %5 : vector<8x32xf32>
    %7 = vector.broadcast %3 : vector<1x32xf32> to vector<8x32xf32>
    %8 = arith.addf %6, %7 : vector<8x32xf32>
    %9 = math.sin %8 : vector<8x32xf32>
    %c0_4 = arith.constant 0 : index
    %c0_5 = arith.constant 0 : index
    %10 = vector.load %arg3[%c0_4, %c0_5] : memref<8x32xf32, #tpu.memory_space<vmem>>, vector<8x32xf32>
    tpu.vector_store %arg3[%c0_4, %c0_5], %9 {strides = array<i32>} : memref<8x32xf32, #tpu.memory_space<vmem>>, vector<8x32xf32>,
    return
  }
  func.func @transform_0(%arg0: i32) -> (i32, i32) {
    %c0_i32 = arith.constant 0 : i32
    %c0_i32_0 = arith.constant 0 : i32
    return %arg0, %c0_i32 : i32, i32
  }
  func.func @transform_1(%arg0: i32) -> (i32, i32) {
    %c0_i32 = arith.constant 0 : i32
    %c0_i32_0 = arith.constant 0 : i32
    %c0_i32_1 = arith.constant 0 : i32
    return %c0_i32, %c0_i32_0 : i32, i32
  }
  func.func @transform_2(%arg0: i32) -> (i32, i32) {
    %c0_i32 = arith.constant 0 : i32
    %c0_i32_0 = arith.constant 0 : i32
    return %arg0, %c0_i32 : i32, i32
  }
}

</mosaic_0001>

<bundles_post_ra>
// kernel: tpu_custom_call.1
= control target key start
LH: loop header
LB: loop body
LE: loop exit
PB: predicated region body
PF: predicated region fallthrough
CT: control target
= control target key end

     0   :  { %v198_v1 = vmov 0   ;;  %s263_s0 = inlined_call_operand.vmem [shape: s32[8,1], index: 0, kind: input, shape index: {}]   ;;  %s264_s1 = inlined_call_operand.vmem [shape: f32[2,32], index: 1, kind: input, shape index: {}]   ;;  %s265_s2 = inlined_call_operand.hbm [shape: f32[8,32], index: 2, kind: output, shape index: {}]  }
   0x1   :  { %v12_v0 = vld [vmem:[%s263_s0] sm:$0xff]  ;;  %169 = vset.pattern.permute.xlu0 %v198_v1 }
   0x2   :  { %v13_v2 = vcvt.s32.f32 %v12_v0 }
   0x3   :  { %7 = vsyncpa [#allocation3], 0  ;;  %v151_v3 = vld [vmem:[%s264_s1] ss:$0 sm:$0xff]  ;;  %v152_v4 = vld [vmem:[%s264_s1 + $0x1] ss:$0 sm:$0xff] }
   0x4   :  { %18 = vperm.xlu0 %169, %v13_v2   ;;  %v199_v19 = vmov 2102212464   ;;  %v200_v21 = vmov 920167782   ;;  %v201_v25 = vmov 1326507024  }
   0x5   :  { %v202_v27 = vmov 683565275   ;;  %v203_v29 = vmov 2475754826   ;;  %v204_v32 = vmov 2131351028  }
   0x6   :  { %s205_s0 = smov [#allocation2]   ;;  %vm135_vm12 = vcmask 261120  }
   0x7   :  { %s143_s1 = sshll.u32 %s205_s0, 4  ;;  %s144_s1 = int_to_ptr.vmem [resolvable:$true] %s143_s1 }
   0x8   :  { %s174_s15 = scalar_lea.vmem %s144_s1, 128  ;;  %p179_p1 = scmp.lt.s32.totalorder %s144_s1, %s144_s1 }
   0x9   :  { %p175_p0 = scmp.ne.s32.totalorder %s144_s1, %s174_s15  ;;  %p180_p2 = scmp.lt.s32.totalorder %s174_s15, %s174_s15 }
   0xb   :  { %p181_p3 = por %p180_p2, %p179_p1 }
   0xd   :  { %p182_p4 = pnand %p181_p3, %p175_p0 }
  0x83   :  { %v19_v5 = vpop.permute.xlu0 %18 }
  0x84   :  { %v25_v6 = vmul.f32 %v151_v3, %v19_v5 }
  0x86   :  { %v230_v7 = vadd.f32 %v152_v4, %v25_v6 }
  0x88   :  { %v34_v8 = vand.u32 2139095040, %v230_v7  ;;  %v31_v9 = vand.u32 2147483647, %v230_v7  ;;  %vm33_vm7 = vcmp.lt.s32.totalorder %v230_v7, 0  ;;  %vm123_vm13 = vweird.f32 %v230_v7 }
  0x8a   :  { %v35_v10 = vshrl.u32 %v34_v8, 23  ;;  %v38_v12 = vand.u32 8388607, %v31_v9  ;;  %vm32_vm8 = vcmp.le.f32.partialorder %v31_v9, 0.7853982 }
  0x8c   :  { %v153_v11 = vadd.s32 4294967169, %v35_v10  ;;  %v39_v15 = vor.u32 8388608, %v38_v12 }
  0x8e   :  { %v41_v13 = vadd.s32 1, %v153_v11  ;;  %v79_v23 = vshll.u32 %v39_v15, 8 }
  0x90   :  { %vm42_vm0 = vcmp.gt.s32.totalorder %v41_v13, 0 }
  0x91   :  { %v43_v14 = vsel %vm42_vm0, %v41_v13, 0 }
  0x92   :  { %v45_v16 = vand.u32 31, %v43_v14  ;;  %v44_v17 = vshrl.u32 %v43_v14, 5 }
  0x94   :  { %v46_v18 = vsub.s32 32, %v45_v16  ;;  %v57_v20 = vshll.u32 %v199_v19, %v45_v16  ;;  %v60_v22 = vshll.u32 %v200_v21, %v45_v16  ;;  %v48_v28 = vshll.u32 %v202_v27, %v45_v16 }
  0x95   :  { %v51_v31 = vshll.u32 %v203_v29, %v45_v16  ;;  %v54_v34 = vshll.u32 %v204_v32, %v45_v16  ;;  %vm66_vm1 = vcmp.lt.s32.totalorder %v44_v17, 4  ;;  %vm63_vm2 = vcmp.lt.s32.totalorder %v44_v17, 1 }
  0x96   :  { %v58_v24 = vshrl.u32 %v200_v21, %v46_v18  ;;  %v61_v26 = vshrl.u32 %v201_v25, %v46_v18  ;;  %v49_v30 = vshrl.u32 %v203_v29, %v46_v18  ;;  %v52_v33 = vshrl.u32 %v204_v32, %v46_v18 }
  0x97   :  { %v55_v35 = vshrl.u32 %v199_v19, %v46_v18  ;;  %v47_v39 = vshrl.u32 %v202_v27, %v46_v18  ;;  %vm64_vm3 = vcmp.lt.s32.totalorder %v44_v17, 2  ;;  %vm65_vm4 = vcmp.lt.s32.totalorder %v44_v17, 3 }
  0x98   :  { %v59_v36 = vor.u32 %v58_v24, %v57_v20  ;;  %v62_v37 = vor.u32 %v61_v26, %v60_v22  ;;  %v50_v38 = vor.u32 %v49_v30, %v48_v28  ;;  %v53_v40 = vor.u32 %v52_v33, %v51_v31 }
  0x99   :  { %v56_v41 = vor.u32 %v55_v35, %v54_v34 }
  0x9a   :  { %v72_v42 = vsel %vm66_vm1, %v59_v36, 920167782  ;;  %v76_v43 = vsel %vm66_vm1, %v62_v37, 1326507024  ;;  %v71_v45 = vsel %vm63_vm2, %v50_v38, %v53_v40  ;;  %v67_v48 = vsel %vm63_vm2, %v47_v39, %v50_v38 }
  0x9b   :  { %v68_v44 = vsel %vm66_vm1, %v56_v41, 2102212464  ;;  %v73_v46 = vsel %vm65_vm4, %v56_v41, %v72_v42  ;;  %v75_v47 = vsel %vm63_vm2, %v53_v40, %v56_v41  ;;  %v77_v51 = vsel %vm65_vm4, %v59_v36, %v76_v43 }
  0x9c   :  { %v69_v49 = vsel %vm65_vm4, %v53_v40, %v68_v44  ;;  %v74_v50 = vsel %vm64_vm3, %v71_v45, %v73_v46  ;;  %v78_v52 = vsel %vm64_vm3, %v75_v47, %v77_v51 }
  0x9d   :  { %v236_v53 = vmul.u32.u64.low %v79_v23, %v74_v50  ;;  %v237_v54 = vmul.u32.u64.high %v79_v23, %v74_v50, %v236_v53  ;;  %v239_v55 = vmul.u32.u64.low %v79_v23, %v78_v52  ;;  %v240_v56 = vmul.u32.u64.high %v79_v23, %v78_v52, %v239_v55 }
  0x9e   :  { %v70_v57 = vsel %vm64_vm3, %v67_v48, %v69_v49 }
  0x9f   :  { %v89_v58 = vadd.s32 1, %v237_v54  ;;  %v86_v59 = vmul.u32 %v79_v23, %v70_v57  ;;  %vm88_vm5 = vc.u32 %v240_v56, %v236_v53  ;;  %v87_v8 = vadd.s32 %v236_v53, %v240_v56 }
  0xa1   :  { %v90_v60 = vsel %vm88_vm5, %v89_v58, %v237_v54 }
  0xa2   :  { %v91_v61 = vadd.s32 %v90_v60, %v86_v59 }
  0xa4   :  { %v92_v62 = vadd.s32 536870912, %v91_v61 }
  0xa6   :  { %v93_v63 = vshrl.u32 %v92_v62, 30 }
  0xa8   :  { %v94_v0 = vshll.u32 %v93_v63, 30  ;;  %v117_v21 = vsub.s32 4, %v93_v63 }
  0xaa   :  { %v95_v1 = vsub.s32 %v91_v61, %v94_v0  ;;  %v118_v24 = vsel %vm33_vm7, %v117_v21, %v93_v63 }
  0xab   :  { %v120_v26 = vsel %vm32_vm8, 0, %v118_v24 }
  0xac   :  { %v97_v2 = vsub.s32 0, %v95_v1  ;;  %v124_v27 = vadd.s32 3, %v120_v26 }
  0xae   :  { %v154_v3 = vmin.u32 %v97_v2, %v95_v1  ;;  %v125_v28 = vand.u32 3, %v124_v27 }
  0xb0   :  { %v99_v4 = vclz %v154_v3  ;;  %vm130_vm9 = vcmp.eq.s32.totalorder %v125_v28, 2  ;;  %vm127_vm10 = vcmp.eq.s32.totalorder %v125_v28, 0  ;;  %vm126_vm11 = vcmp.lt.s32.totalorder %v125_v28, 2 }
  0xb2   :  { %v155_v5 = vadd.s32 4294967294, %v99_v4 }
  0xb4   :  { %vm156_vm6 = vcmp.lt.s32.totalorder %v155_v5, 0 }
  0xb5   :  { %v102_v6 = vsel %vm156_vm6, 0, %v155_v5 }
  0xb6   :  { %v103_v10 = vsub.s32 32, %v102_v6  ;;  %v107_v11 = vsub.s32 4294967266, %v102_v6  ;;  %v104_v12 = vshll.u32 %v95_v1, %v102_v6 }
  0xb8   :  { %v105_v13 = vshrl.u32 %v87_v8, %v103_v10  ;;  %v108_v14 = vadd.s32 127, %v107_v11 }
  0xba   :  { %v106_v15 = vor.u32 %v105_v13, %v104_v12  ;;  %v109_v16 = vshll.u32 %v108_v14, 23 }
  0xbc   :  { %v110_v17 = vor.u32 4788187, %v109_v16  ;;  %v113_v19 = vcvt.s32.f32 %v106_v15 }
  0xbe   :  { %v111_v18 = vand.u32 2147483647, %v110_v17 }
  0xc0   :  { %v114_v20 = vmul.f32 %v113_v19, %v111_v18 }
  0xc2   :  { %v115_v22 = vxor.u32 2147483648, %v114_v20 }
  0xc4   :  { %v116_v23 = vsel %vm33_vm7, %v115_v22, %v114_v20 }
  0xc5   :  { %v119_v25 = vsel %vm32_vm8, %v230_v7, %v116_v23 }
  0xc6   :  { %170 = vcosq.f32 %v119_v25 }
  0xc7   :  { %172 = vsinq.f32 %v119_v25 }
  0xd0   :  { %v171_v29 = vpop.eup %170 }
  0xd1   :  { %v173_v30 = vpop.eup %172  ;;  %v131_v31 = vxor.u32 2147483648, %v171_v29 }
  0xd2   :  { %v128_v32 = vxor.u32 2147483648, %v173_v30 }
  0xd3   :  { %v132_v33 = vsel %vm130_vm9, %v131_v31, %v173_v30 }
  0xd4   :  { %v129_v9 = vsel %vm127_vm10, %v171_v29, %v128_v32 }
  0xd5   :  { %v133_v34 = vsel %vm126_vm11, %v129_v9, %v132_v33 }
  0xd6   :  { %v134_v35 = vsel %vm123_vm13, nan, %v133_v34 }
  0xd7   :  { %136 = vst.msk [vmem:[#allocation2] sm:$0xff] %vm135_vm12, %v134_v35 }
  0xd8   :  { %185 = shalt.err (!%p182_p4)
}
  0xd9   :  { %s186_s18 = scalar_lea.hbm %s265_s2, 128 }
  0xda   :  { %p187_p5 = scmp.ne.s32.totalorder %s265_s2, %s186_s18  ;;  %p190_p6 = scmp.lt.u32.totalorder %s186_s18, %s265_s2 }
  0xdc   :  { %p192_p7 = pnand %p190_p6, %p187_p5 }
  0xde   :  { %195 = shalt.err (!%p192_p7)
}
  0xdf   :  { %146 = dma.vmem_to_hbm [thread:$0]  %s144_s1, 128, %s265_s2, [#allocation3]  }
  0xe0   :  { %196 = dma.done.wait [#allocation3], 128  }
  0xe1   :  { %197 = vsyncadd [#allocation3], 4294967168 }
  0xe2   :  { %150 = vsyncpa [#allocation3], 1 }

</bundles_post_ra>
